<compile_context>
chip_gen: v6e
topology: v6e:2x2x1
jax: 0.10.0
libtpu: 0.0.40
codegen_flags: <defaults>
</compile_context>

<pallas_src>
import functools

import jax
import jax.numpy as jnp
from jax.experimental import pallas as pl
from jax.experimental.pallas import tpu as pltpu


def _round_up(x, m):
    return ((x + m - 1) // m) * m


def _bce_row_sum_kernel(x_ref, t_ref, m_ref, o_ref, acc_ref, *, inv_len):
    """Grid = (row tiles, L tiles).  Accumulates masked BCE-with-logits row
    sums over the L axis in a (TM, 1) f32 scratch; writes mean at last step."""
    j = pl.program_id(1)

    @pl.when(j == 0)
    def _init():
        acc_ref[...] = jnp.zeros_like(acc_ref)

    x = x_ref[...].astype(jnp.float32)
    t = t_ref[...].astype(jnp.float32)
    m = m_ref[...].astype(jnp.float32)
    # Numerically stable BCE with logits: max(x,0) - x*t + log1p(exp(-|x|))
    loss = (jnp.maximum(x, 0.0) - x * t + jnp.log1p(jnp.exp(-jnp.abs(x)))) * m
    acc_ref[...] += jnp.sum(loss, axis=1, keepdims=True)

    @pl.when(j == pl.num_programs(1) - 1)
    def _finalize():
        o_ref[...] = acc_ref[...] * inv_len


def _vmem_capacity_bytes():
    try:
        return int(pltpu.get_tpu_info().vmem_capacity_bytes)
    except Exception:
        return 64 << 20  # assume the smallest generation (v7x: 64 MiB)


def _choose_tiling(B, L, itemsizes):
    """Pick (TM, TL, padded_B, padded_L): the biggest double-buffered working
    set that stays comfortably inside this generation's VMEM."""
    sub = 32 // min(itemsizes)          # sublane multiple for narrowest dtype
    lane = 128
    Bp = _round_up(B, sub)
    Lp = _round_up(L, lane)

    vmem_cap = _vmem_capacity_bytes()
    # 3 inputs x 2 (double buffering) x TM x TL bytes must stay well in VMEM.
    bytes_per_elem = 2 * sum(itemsizes)
    budget = min(vmem_cap // 4, 24 << 20)
    max_block_elems = max(sub * lane, budget // bytes_per_elem)

    # L (reduction / lane) tile: as large as possible, capped at 2048.
    tl_cap = min(Lp, 2048)
    nl = pl.cdiv(Lp, tl_cap)
    tl = _round_up(pl.cdiv(Lp, nl), lane)

    # Row (parallel / sublane) tile: fill the remaining budget, balance the
    # grid so padding waste stays < one sublane group per tile.
    tm_cap = min(Bp, max(sub, (max_block_elems // tl) // sub * sub))
    nb = pl.cdiv(Bp, tm_cap)
    tm = _round_up(pl.cdiv(Bp, nb), sub)

    return tm, tl, nb * tm, nl * tl


def sigmoid_bce_loss(inputs, targets, mask):
    """Pallas equivalent of SigmoidBinaryCrossEntropyLoss.forward.

    inputs/targets/mask: (B, L).  bf16 inputs/targets are recommended (halves
    HBM traffic); the cast to f32 happens inside the kernel.
    Returns (B,) float32 per-row mean of masked BCE-with-logits loss.
    """
    B, L = inputs.shape
    itemsizes = [jnp.dtype(a.dtype).itemsize for a in (inputs, targets, mask)]
    tm, tl, pad_B, pad_L = _choose_tiling(B, L, itemsizes)

    def pad(a):
        pb, pc = pad_B - a.shape[0], pad_L - a.shape[1]
        if pb or pc:
            # Zero padding: padded mask entries are 0 => zero loss contribution.
            a = jnp.pad(a, ((0, pb), (0, pc)))
        return a

    x, t, m = pad(inputs), pad(targets), pad(mask)

    grid = (pad_B // tm, pad_L // tl)
    in_block = lambda i, j: (i, j)

    footprint = 2 * tm * tl * sum(itemsizes) + 2 * 4 * tm * 128  # inputs + out/scratch pad
    vmem_limit = int(min(_vmem_capacity_bytes(), footprint + (16 << 20)))

    out = pl.pallas_call(
        functools.partial(_bce_row_sum_kernel, inv_len=1.0 / L),
        out_shape=jax.ShapeDtypeStruct((pad_B, 1), jnp.float32),
        grid_spec=pltpu.PrefetchScalarGridSpec(
            num_scalar_prefetch=0,
            grid=grid,
            in_specs=[
                pl.BlockSpec((tm, tl), in_block),
                pl.BlockSpec((tm, tl), in_block),
                pl.BlockSpec((tm, tl), in_block),
            ],
            out_specs=pl.BlockSpec((tm, 1), lambda i, j: (i, 0)),
            scratch_shapes=[pltpu.VMEM((tm, 1), jnp.float32)],
        ),
        compiler_params=pltpu.CompilerParams(
            # Rows are independent -> "parallel" (2 TCs on v7x, neutral on
            # v5e/v6e); L is a carried reduction -> "arbitrary".
            dimension_semantics=("parallel", "arbitrary"),
            vmem_limit_bytes=vmem_limit,
        ),
    )(x, t, m)
    return out[:B, 0]


def _reference(inputs, targets, mask):
    x = inputs.astype(jnp.float32)
    t = targets.astype(jnp.float32)
    m = mask.astype(jnp.float32)
    loss = (jnp.maximum(x, 0.0) - x * t + jnp.log1p(jnp.exp(-jnp.abs(x)))) * m
    return jnp.mean(loss, axis=1)


if __name__ == "__main__":
    # Small word2vec-like (batch_size, len); L=60 exercises the padding path.
    B, L = 8, 60
    key = jax.random.PRNGKey(0)
    k1, k2, k3 = jax.random.split(key, 3)

    # bf16 logits/targets halve HBM traffic; cast to f32 happens in-kernel.
    inputs = (jax.random.normal(k1, (B, L), dtype=jnp.float32) * 3.0).astype(jnp.bfloat16)
    targets = (jax.random.uniform(k2, (B, L)) > 0.5).astype(jnp.bfloat16)
    mask = (jax.random.uniform(k3, (B, L)) > 0.25).astype(jnp.float32)

    out = jax.block_until_ready(sigmoid_bce_loss(inputs, targets, mask))
    ref = jax.block_until_ready(_reference(inputs, targets, mask))

    assert out.shape == (B,), out.shape
    assert jnp.allclose(out, ref, atol=1e-5, rtol=1e-5), (out, ref)
    print("KERNEL_OK")
</pallas_src>

<mosaic_0001>
module attributes {stable_mosaic.version = 11 : i64} {
  func.func @_bce_row_sum_kernel(%arg0: i32, %arg1: i32, %arg2: memref<16x128xbf16, #tpu.memory_space<vmem>>, %arg3: memref<16x128xbf16, #tpu.memory_space<vmem>>, %arg4: memref<16x128xf32, #tpu.memory_space<vmem>>, %arg5: memref<16x1xf32, #tpu.memory_space<vmem>>, %arg6: memref<16x1xf32, #tpu.memory_space<vmem>>) attributes {dimension_semantics = [#tpu.dimension_semantics<parallel>, #tpu.dimension_semantics<arbitrary>], iteration_bounds = array<i64: 1, 1>, scalar_prefetch = 0 : i64, scratch_operands = 1 : i64, tpu.core_type = #tpu.core_type<tc>, window_params = [{transform_indices = @transform_0, window_bounds = array<i64: 16, 128>}, {transform_indices = @transform_1, window_bounds = array<i64: 16, 128>}, {transform_indices = @transform_2, window_bounds = array<i64: 16, 128>}, {transform_indices = @transform_3, window_bounds = array<i64: 16, 1>}]} {
    %c0_i32 = arith.constant 0 : i32
    %0 = arith.cmpi eq, %arg1, %c0_i32 : i32
    %1 = arith.extui %0 : i1 to i32
    %c0_i32_0 = arith.constant 0 : i32
    %2 = arith.cmpi ne, %1, %c0_i32_0 : i32
    scf.if %2 {
      %cst_14 = arith.constant 0.000000e+00 : f32
      %27 = vector.broadcast %cst_14 : f32 to vector<16x1xf32>
      %c0_15 = arith.constant 0 : index
      %c0_16 = arith.constant 0 : index
      %28 = vector.load %arg6[%c0_15, %c0_16] : memref<16x1xf32, #tpu.memory_space<vmem>>, vector<16x1xf32>
      tpu.vector_store %arg6[%c0_15, %c0_16], %27 {strides = array<i32>} : memref<16x1xf32, #tpu.memory_space<vmem>>, vector<16x1xf32>,
    } else {
    }
    %c0 = arith.constant 0 : index
    %c0_1 = arith.constant 0 : index
    %3 = vector.load %arg2[%c0, %c0_1] : memref<16x128xbf16, #tpu.memory_space<vmem>>, vector<16x128xbf16>
    %4 = arith.extf %3 : vector<16x128xbf16> to vector<16x128xf32>
    %c0_2 = arith.constant 0 : index
    %c0_3 = arith.constant 0 : index
    %5 = vector.load %arg3[%c0_2, %c0_3] : memref<16x128xbf16, #tpu.memory_space<vmem>>, vector<16x128xbf16>
    %6 = arith.extf %5 : vector<16x128xbf16> to vector<16x128xf32>
    %c0_4 = arith.constant 0 : index
    %c0_5 = arith.constant 0 : index
    %7 = vector.load %arg4[%c0_4, %c0_5] : memref<16x128xf32, #tpu.memory_space<vmem>>, vector<16x128xf32>
    %cst = arith.constant 0.000000e+00 : f32
    %8 = vector.broadcast %cst : f32 to vector<16x128xf32>
    %9 = arith.maximumf %4, %8 : vector<16x128xf32>
    %10 = arith.mulf %4, %6 : vector<16x128xf32>
    %11 = arith.subf %9, %10 : vector<16x128xf32>
    %12 = math.absf %4 : vector<16x128xf32>
    %cst_6 = arith.constant 0.000000e+00 : f32
    %13 = vector.broadcast %cst_6 : f32 to vector<16x128xf32>
    %14 = arith.subf %13, %12 : vector<16x128xf32>
    %15 = math.exp %14 : vector<16x128xf32>
    %16 = math.log1p %15 : vector<16x128xf32>
    %17 = arith.addf %11, %16 : vector<16x128xf32>
    %18 = arith.mulf %17, %7 : vector<16x128xf32>
    %c0_7 = arith.constant 0 : index
    %c0_8 = arith.constant 0 : index
    %19 = vector.load %arg6[%c0_7, %c0_8] : memref<16x1xf32, #tpu.memory_space<vmem>>, vector<16x1xf32>
    %cst_9 = arith.constant dense<0.000000e+00> : vector<16xf32>
    %20 = vector.multi_reduction <add>, %18, %cst_9 [1] : vector<16x128xf32> to vector<16xf32>
    %21 = vector.shape_cast %20 : vector<16xf32> to vector<16x1xf32>
    %22 = arith.addf %19, %21 : vector<16x1xf32>
    %c0_10 = arith.constant 0 : index
    %c0_11 = arith.constant 0 : index
    %23 = vector.load %arg6[%c0_10, %c0_11] : memref<16x1xf32, #tpu.memory_space<vmem>>, vector<16x1xf32>
    tpu.vector_store %arg6[%c0_10, %c0_11], %22 {strides = array<i32>} : memref<16x1xf32, #tpu.memory_space<vmem>>, vector<16x1xf32>,
    %c0_i32_12 = arith.constant 0 : i32
    %24 = arith.cmpi eq, %arg1, %c0_i32_12 : i32
    %25 = arith.extui %24 : i1 to i32
    %c0_i32_13 = arith.constant 0 : i32
    %26 = arith.cmpi ne, %25, %c0_i32_13 : i32
    scf.if %26 {
      %c0_14 = arith.constant 0 : index
      %c0_15 = arith.constant 0 : index
      %27 = vector.load %arg6[%c0_14, %c0_15] : memref<16x1xf32, #tpu.memory_space<vmem>>, vector<16x1xf32>
      %cst_16 = arith.constant 0.0166666675 : f32
      %28 = vector.broadcast %cst_16 : f32 to vector<16x1xf32>
      %29 = arith.mulf %27, %28 : vector<16x1xf32>
      %c0_17 = arith.constant 0 : index
      %c0_18 = arith.constant 0 : index
      %30 = vector.load %arg5[%c0_17, %c0_18] : memref<16x1xf32, #tpu.memory_space<vmem>>, vector<16x1xf32>
      tpu.vector_store %arg5[%c0_17, %c0_18], %29 {strides = array<i32>} : memref<16x1xf32, #tpu.memory_space<vmem>>, vector<16x1xf32>,
    } else {
    }
    return
  }
  func.func @transform_0(%arg0: i32, %arg1: i32) -> (i32, i32) {
    %c0_i32 = arith.constant 0 : i32
    return %arg0, %arg1 : i32, i32
  }
  func.func @transform_1(%arg0: i32, %arg1: i32) -> (i32, i32) {
    %c0_i32 = arith.constant 0 : i32
    return %arg0, %arg1 : i32, i32
  }
  func.func @transform_2(%arg0: i32, %arg1: i32) -> (i32, i32) {
    %c0_i32 = arith.constant 0 : i32
    return %arg0, %arg1 : i32, i32
  }
  func.func @transform_3(%arg0: i32, %arg1: i32) -> (i32, i32) {
    %c0_i32 = arith.constant 0 : i32
    %c0_i32_0 = arith.constant 0 : i32
    return %arg0, %c0_i32 : i32, i32
  }
}

</mosaic_0001>

<bundles_post_ra>
// kernel: tpu_custom_call.1
= control target key start
LH: loop header
LB: loop body
LE: loop exit
PB: predicated region body
PF: predicated region fallthrough
CT: control target
= control target key end

     0   :  { %8 = vsyncpa [#allocation4], 0  ;;  %s271_s0 = inlined_call_operand.hbm [shape: bf16[16,128], index: 0, kind: input, shape index: {}]   ;;  %s272_s1 = inlined_call_operand.hbm [shape: bf16[16,128], index: 1, kind: input, shape index: {}]   ;;  %s273_s2 = inlined_call_operand.hbm [shape: f32[16,128], index: 2, kind: input, shape index: {}]   ;;  %s274_s3 = inlined_call_operand.vmem [shape: f32[16,1], index: 3, kind: output, shape index: {}]  }
   0x1   :  { %9 = vsyncpa [#allocation6], 0  ;;  %s222_s12 = smov [#allocation5]   ;;  %s223_s14 = smov [#allocation3]  }
   0x2   :  { %s27_s13 = sshll.u32 %s222_s12, 4  ;;  %s15_s15 = sshll.u32 %s223_s14, 4  ;;  %s28_s13 = int_to_ptr.vmem [resolvable:$true] %s27_s13  ;;  %s16_s15 = int_to_ptr.vmem [resolvable:$true] %s15_s15 }
   0x3   :  { %s166_s16 = scalar_lea.vmem %s28_s13, 128  ;;  %p171_p1 = scmp.lt.s32.totalorder %s28_s13, %s28_s13 }
   0x4   :  { %p167_p0 = scmp.ne.s32.totalorder %s28_s13, %s166_s16  ;;  %p172_p2 = scmp.lt.s32.totalorder %s166_s16, %s166_s16 }
   0x6   :  { %p173_p3 = por %p172_p2, %p171_p1 }
   0x8   :  { %p174_p4 = pnand %p173_p3, %p167_p0 }
   0xa   :  { %177 = shalt.err (!%p174_p4)
}
   0xb   :  { %s224_s17 = smov 64   ;;  %s225_s18 = smov 4  }
   0xc   :  { %33 = dma.hbm_to_vmem [thread:$0]  %s272_s1, 128, %s28_s13, [#allocation6], %s224_s17, %s224_s17, %s225_s18  }
   0xd   :  { %s186_s21 = scalar_lea.vmem %s16_s15, 128  ;;  %p191_p6 = scmp.lt.s32.totalorder %s16_s15, %s16_s15 }
   0xe   :  { %p187_p5 = scmp.ne.s32.totalorder %s16_s15, %s186_s21  ;;  %p192_p7 = scmp.lt.s32.totalorder %s186_s21, %s186_s21 }
  0x10   :  { %p193_p8 = por %p192_p7, %p191_p6 }
  0x12   :  { %p194_p9 = pnand %p193_p8, %p187_p5 }
  0x14   :  { %197 = shalt.err (!%p194_p9)
}
  0x15   :  { %21 = dma.hbm_to_vmem [thread:$0]  %s271_s0, 128, %s16_s15, [#allocation4], %s224_s17, %s224_s17, %s225_s18  }
  0x16   :  { %s226_s24 = smov [#allocation7]  }
  0x17   :  { %s39_s25 = sshll.u32 %s226_s24, 4  ;;  %s40_s25 = int_to_ptr.vmem [resolvable:$true] %s39_s25 }
  0x18   :  { %s206_s26 = scalar_lea.vmem %s40_s25, 256  ;;  %p211_p11 = scmp.lt.s32.totalorder %s40_s25, %s40_s25 }
  0x19   :  { %p207_p10 = scmp.ne.s32.totalorder %s40_s25, %s206_s26  ;;  %p212_p12 = scmp.lt.s32.totalorder %s206_s26, %s206_s26 }
  0x1b   :  { %p213_p13 = por %p212_p12, %p211_p11 }
  0x1d   :  { %p214_p0 = pnand %p213_p13, %p207_p10 }
  0x1f   :  { %217 = shalt.err (!%p214_p0)
}
  0x20   :  { %s227_s1 = smov 128   ;;  %s228_s27 = smov 8  }
  0x21   :  { %45 = dma.hbm_to_vmem [thread:$0]  %s273_s2, 256, %s40_s25, [#allocation6], %s227_s1, %s227_s1, %s228_s27  }
  0x22   :  { %218 = dma.done.wait [#allocation4], 128  }
  0x23   :  { %219 = vsyncadd [#allocation4], 4294967168 }
  0x24   :  { %220 = dma.done.wait [#allocation6], 384  }
  0x25   :  { %221 = vsyncadd [#allocation6], 4294966912  ;;  %vm59_vm0 = vcmask 7168   ;;  %v229_v0 = vmov 0.0   ;;  %v135_v1 = vld [vmem:[#allocation3] sm:$0xff]   ;;  %v139_v14 = vld [vmem:[#allocation5] sm:$0xff]  }
  0x26   :  { %60 = vst.msk [vmem:[#allocation2] sm:$0xff] %vm59_vm0, %v229_v0  ;;  %61 = vst.msk [vmem:[#allocation2 + $0x8] sm:$0xff] %vm59_vm0, %v229_v0  ;;  %v136_v2 = vunpack.c.l.bf16 %v135_v1  ;;  %v137_v3 = vunpack.c.h.bf16 %v135_v1  ;;  %v140_v16 = vunpack.c.l.bf16 %v139_v14  ;;  %v141_v18 = vunpack.c.h.bf16 %v139_v14  ;;  %v70_v35 = vld [vmem:[#allocation7] sm:$0xff]  ;;  %v71_v39 = vld [vmem:[#allocation7 + $0x8] sm:$0xff] }
  0x28   :  { %v78_v4 = vand.u32 2147483647, %v136_v2  ;;  %v79_v5 = vand.u32 2147483647, %v137_v3  ;;  %v72_v20 = vmax.f32 %v136_v2, 0.0  ;;  %v74_v21 = vmul.f32 %v140_v16, %v136_v2 }
  0x29   :  { %v73_v24 = vmax.f32 %v137_v3, 0.0  ;;  %v75_v25 = vmul.f32 %v141_v18, %v137_v3 }
  0x2a   :  { %v80_v6 = vsub.f32 0.0, %v78_v4  ;;  %v81_v7 = vsub.f32 0.0, %v79_v5  ;;  %v76_v29 = vsub.f32 %v72_v20, %v74_v21 }
  0x2b   :  { %v77_v33 = vsub.f32 %v73_v24, %v75_v25 }
  0x2c   :  { %v82_v8 = vmul.f32 1.442695, %v80_v6  ;;  %v84_v9 = vmul.f32 1.442695, %v81_v7 }
  0x2d   :  { %v108_v43 = vld [vmem:[#allocation2] sm:$0xff]  ;;  %v109_v46 = vld [vmem:[#allocation2 + $0x8] sm:$0xff] }
  0x2e   :  { %150 = vpow2.f32 %v82_v8 }
  0x2f   :  { %152 = vpow2.f32 %v84_v9 }
  0x3b   :  { %v151_v10 = vpop.eup %150 }
  0x3c   :  { %v153_v11 = vpop.eup %152  ;;  %v86_v12 = vadd.f32 1.0, %v151_v10  ;;  %v89_v15 = vmul.f32 -0.5, %v151_v10  ;;  %v92_v22 = vand.u32 2147483647, %v151_v10 }
  0x3d   :  { %v95_v13 = vadd.f32 1.0, %v153_v11  ;;  %v98_v17 = vmul.f32 -0.5, %v153_v11  ;;  %v101_v26 = vand.u32 2147483647, %v153_v11 }
  0x3e   :  { %154 = vlog2.f32 %v86_v12  ;;  %v90_v19 = vadd.f32 1.0, %v89_v15  ;;  %vm93_vm1 = vcmp.lt.f32.partialorder %v92_v22, 0.0004427343 }
  0x3f   :  { %156 = vlog2.f32 %v95_v13  ;;  %v99_v23 = vadd.f32 1.0, %v98_v17  ;;  %vm102_vm2 = vcmp.lt.f32.partialorder %v101_v26, 0.0004427343 }
  0x40   :  { %v91_v27 = vmul.f32 %v151_v10, %v90_v19 }
  0x41   :  { %v100_v30 = vmul.f32 %v153_v11, %v99_v23 }
  0x4b   :  { %v155_v28 = vpop.eup %154 }
  0x4c   :  { %v157_v31 = vpop.eup %156  ;;  %v88_v32 = vmul.f32 0.6931472, %v155_v28 }
  0x4d   :  { %v97_v34 = vmul.f32 0.6931472, %v157_v31 }
  0x4e   :  { %v94_v36 = vsel %vm93_vm1, %v91_v27, %v88_v32 }
  0x4f   :  { %v104_v37 = vadd.f32 %v94_v36, %v76_v29  ;;  %v103_v38 = vsel %vm102_vm2, %v100_v30, %v97_v34 }
  0x50   :  { %v105_v40 = vadd.f32 %v103_v38, %v77_v33 }
  0x51   :  { %v106_v41 = vmul.f32 %v104_v37, %v70_v35 }
  0x52   :  { %v107_v42 = vmul.f32 %v105_v40, %v71_v39 }
  0x53   :  { %110 = vadd.xlane.f32.xlu0 %v106_v41 }
  0x57   :  { %112 = vadd.xlane.f32.xlu0 %v107_v42 }
  0xdc   :  { %v111_v44 = vpop.xlane.xlu0 %110 }
  0xdd   :  { %v114_v45 = vadd.f32 %v111_v44, %v108_v43 }
  0xdf   :  { %117 = vst.msk [vmem:[#allocation2] sm:$0xff] %vm59_vm0, %v114_v45 }
  0xe0   :  { %v113_v47 = vpop.xlane.xlu0 %112 }
  0xe1   :  { %v115_v48 = vadd.f32 %v113_v47, %v109_v46 }
  0xe3   :  { %118 = vst.msk [vmem:[#allocation2 + $0x8] sm:$0xff] %vm59_vm0, %v115_v48 }
  0xe6   :  { %v122_v49 = vld [vmem:[#allocation2] sm:$0xff] }
  0xe7   :  { %v124_v50 = vmul.f32 0.016666668, %v122_v49 }
  0xe9   :  { %126 = vst.msk [vmem:[%s274_s3] sm:$0xff] %vm59_vm0, %v124_v50 }
  0xea   :  { %v123_v51 = vld [vmem:[#allocation2 + $0x8] sm:$0xff] }
  0xeb   :  { %v125_v52 = vmul.f32 0.016666668, %v123_v51 }
  0xed   :  { %127 = vst.msk [vmem:[%s274_s3 + $0x8] sm:$0xff] %vm59_vm0, %v125_v52 }
  0xee   :  { %132 = vsyncpa [#allocation4], 1 }
  0xef   :  { %133 = vsyncpa [#allocation6], 1 }

</bundles_post_ra>
